<compile_context>
chip_gen: v6e
topology: v6e:2x2x1
jax: 0.10.0
libtpu: 0.0.40
codegen_flags: <defaults>
</compile_context>

<pallas_src>
import jax
import jax.numpy as jnp
from jax.experimental import pallas as pl
from jax.experimental.pallas import tpu as pltpu


def _onehot_argmax_kernel(x_ref, o_ref):
    # x_ref / o_ref: (C, tl) tile -- channels on sublanes, pixels on lanes.
    x = x_ref[...]
    C = x.shape[0]
    mx = jnp.max(x, axis=0, keepdims=True)                       # (1, tl), VPU-cheap
    is_max = x == mx
    # first-occurrence tie-break, matching torch.argmax semantics
    # TODO(synk): NaN rows produce an all-zero one-hot here, unlike torch.argmax.
    ch = jax.lax.broadcasted_iota(jnp.int32, x.shape, 0)          # channel index
    first = jnp.min(jnp.where(is_max, ch, C), axis=0, keepdims=True)
    o_ref[...] = (ch == first).astype(o_ref.dtype)


def _round_up(v, m):
    return -(-v // m) * m


def output_normalization(x, *, max_tile=8192, vmem_budget_bytes=16 * 1024 * 1024):
    """x: (N, C, H, W) -> (N, H, W, C) one-hot of argmax over the channel dim."""
    N, C, H, W = x.shape
    L = H * W
    x3 = x.reshape(N, C, L)  # free view of the NCHW tensor; no extra HBM pass

    # Pixel-tile size: multiple of 128 (lane width), capped by a conservative VMEM
    # budget (double-buffering x (in + out) x sublane-padded C x 4 B) so it also
    # fits v7x's smaller scoped-VMEM default, and capped by max_tile.
    c_pad = _round_up(C, 8)
    bytes_per_pixel = 2 * 2 * c_pad * 4
    tl_cap = max(128, (vmem_budget_bytes // bytes_per_pixel) // 128 * 128)
    tl = min(max_tile, tl_cap, _round_up(L, 128))
    grid = (N, pl.cdiv(L, tl))

    out3 = pl.pallas_call(
        _onehot_argmax_kernel,
        out_shape=jax.ShapeDtypeStruct((N, C, L), x.dtype),
        grid_spec=pltpu.PrefetchScalarGridSpec(
            num_scalar_prefetch=0,
            grid=grid,
            in_specs=[pl.BlockSpec((None, C, tl), lambda n, l: (n, 0, l))],
            out_specs=pl.BlockSpec((None, C, tl), lambda n, l: (n, 0, l)),
        ),
        compiler_params=pltpu.CompilerParams(
            dimension_semantics=("parallel", "parallel"),
        ),
    )(x3)

    # Single XLA transpose of the one-hot result into the PyTorch NHWC layout.
    return jnp.transpose(out3.reshape(N, C, H, W), (0, 2, 3, 1))


if __name__ == "__main__":
    key = jax.random.PRNGKey(0)
    N, C, H, W = 2, 4, 16, 16
    x = jax.random.normal(key, (N, C, H, W), dtype=jnp.float32)

    out = output_normalization(x)
    jax.block_until_ready(out)

    # reference check (plain JAX)
    ref_idx = jnp.argmax(x, axis=1)                        # (N, H, W)
    ref = jax.nn.one_hot(ref_idx, C, dtype=x.dtype)        # (N, H, W, C)
    assert out.shape == (N, H, W, C)
    assert out.dtype == x.dtype
    assert bool(jnp.all(out == ref))

    print("KERNEL_OK")
</pallas_src>

<mosaic_0001>
module attributes {stable_mosaic.version = 11 : i64} {
  func.func @_onehot_argmax_kernel(%arg0: i32, %arg1: i32, %arg2: memref<1x4x256xf32, #tpu.memory_space<vmem>>, %arg3: memref<1x4x256xf32, #tpu.memory_space<vmem>>) attributes {dimension_semantics = [#tpu.dimension_semantics<parallel>, #tpu.dimension_semantics<parallel>], iteration_bounds = array<i64: 2, 1>, scalar_prefetch = 0 : i64, scratch_operands = 0 : i64, tpu.core_type = #tpu.core_type<tc>, window_params = [{transform_indices = @transform_0, window_bounds = array<i64: 1, 4, 256>}, {transform_indices = @transform_1, window_bounds = array<i64: 1, 4, 256>}]} {
    %c0 = arith.constant 0 : index
    %c0_0 = arith.constant 0 : index
    %c0_1 = arith.constant 0 : index
    %0 = vector.load %arg2[%c0, %c0_0, %c0_1] : memref<1x4x256xf32, #tpu.memory_space<vmem>>, vector<1x4x256xf32>
    %1 = vector.shape_cast %0 : vector<1x4x256xf32> to vector<4x256xf32>
    %cst = arith.constant dense<0xFF800000> : vector<256xf32>
    %2 = vector.multi_reduction <maximumf>, %1, %cst [0] : vector<4x256xf32> to vector<256xf32>
    %3 = vector.shape_cast %2 : vector<256xf32> to vector<1x256xf32>
    %4 = vector.broadcast %3 : vector<1x256xf32> to vector<4x256xf32>
    %5 = arith.cmpf oeq, %1, %4 : vector<4x256xf32>
    %6 = tpu.iota {dimensions = array<i32: 0>} : vector<4x256xi32>
    %c4_i32 = arith.constant 4 : i32
    %7 = vector.broadcast %c4_i32 : i32 to vector<4x256xi32>
    %8 = arith.select %5, %6, %7 : vector<4x256xi1>, vector<4x256xi32>
    %cst_2 = arith.constant dense<2147483647> : vector<256xi32>
    %9 = vector.multi_reduction <minsi>, %8, %cst_2 [0] : vector<4x256xi32> to vector<256xi32>
    %10 = vector.shape_cast %9 : vector<256xi32> to vector<1x256xi32>
    %11 = vector.broadcast %10 : vector<1x256xi32> to vector<4x256xi32>
    %12 = arith.cmpi eq, %6, %11 : vector<4x256xi32>
    %13 = arith.extui %12 : vector<4x256xi1> to vector<4x256xi32>
    %14 = arith.sitofp %13 : vector<4x256xi32> to vector<4x256xf32>
    %c0_3 = arith.constant 0 : index
    %c0_4 = arith.constant 0 : index
    %c0_5 = arith.constant 0 : index
    %15 = vector.load %arg3[%c0_3, %c0_4, %c0_5] : memref<1x4x256xf32, #tpu.memory_space<vmem>>, vector<1x4x256xf32>
    %16 = vector.shape_cast %15 : vector<1x4x256xf32> to vector<4x256xf32>
    %17 = vector.shape_cast %14 : vector<4x256xf32> to vector<1x4x256xf32>
    tpu.vector_store %arg3[%c0_3, %c0_4, %c0_5], %17 {strides = array<i32>} : memref<1x4x256xf32, #tpu.memory_space<vmem>>, vector<1x4x256xf32>,
    return
  }
  func.func @transform_0(%arg0: i32, %arg1: i32) -> (i32, i32, i32) {
    %c0_i32 = arith.constant 0 : i32
    %c0_i32_0 = arith.constant 0 : i32
    return %arg0, %c0_i32, %arg1 : i32, i32, i32
  }
  func.func @transform_1(%arg0: i32, %arg1: i32) -> (i32, i32, i32) {
    %c0_i32 = arith.constant 0 : i32
    %c0_i32_0 = arith.constant 0 : i32
    return %arg0, %c0_i32, %arg1 : i32, i32, i32
  }
}

</mosaic_0001>

<bundles_post_ra>
// kernel: tpu_custom_call.1
= control target key start
LH: loop header
LB: loop body
LE: loop exit
PB: predicated region body
PF: predicated region fallthrough
CT: control target
= control target key end

     0   :  { %6 = vsyncpa [#allocation3], 0  ;;  %s670_s0 = inlined_call_operand.hbm [shape: f32[2,4,256], index: 0, kind: input, shape index: {}]   ;;  %s671_s1 = inlined_call_operand.hbm [shape: f32[2,4,256], index: 1, kind: output, shape index: {}]  }
   0x1   :  { %8 = vsyncpa [#allocation3 + $0x1], 0 }
   0x2   :  { %9 = vsyncpa [#allocation4], 0 }
   0x3   :  { %11 = vsyncpa [#allocation4 + $0x1], 0  ;;  %s528_s6 = smov 0   ;;  %s530_s7 = smov 0  }
   0x4   :  { %s532_s8 = smov 0   ;;  %s534_s9 = smov 0  }
   0x5   :  { %s536_s10 = smov 0   ;;  %s538_s11 = smov 0  }
   0x6 LB: > { %s320_s12 = sadd.s32 4294967295, %s512_s11   ;;  %s321_s13 = sadd.s32 4294967294, %s512_s11   ;;  %s512_s11 = sphi %s538_s11, %s17_s11   ;;  %s508_s10 = sphi %s536_s10, %s683_s10   ;;  %s504_s9 = sphi %s534_s9, %s682_s9   ;;  %s500_s8 = sphi %s532_s8, %s681_s8   ;;  %s496_s7 = sphi %s530_s7, %s680_s7   ;;  %s492_s6 = sphi %s528_s6, %s679_s6  }
   0x7   : > { %s29_s14 = sadd.s32 1, %s508_s10  ;;  %s38_s15 = sadd.s32 1, %s500_s8 }
   0x8   : > { %p31_p0 = scmp.ge.s32.totalorder %s29_s14, 2  ;;  %p45_p1 = scmp.ne.s32.totalorder %s500_s8, %s496_s7 }
   0x9   : > { %p46_p2 = scmp.eq.s32.totalorder %s512_s11, 0  ;;  %p51_p3 = scmp.ne.s32.totalorder %s496_s7, %s492_s6 }
   0xa   : > { %s685_s14 = smov (%p31_p0, %s29_s14), 0  ;;  %p52_p5 = scmp.eq.s32.totalorder %s320_s12, 0 }
   0xb   : > { %p569_p4 = por %p46_p2, %p45_p1  ;;  %s33_s17 = ssub.s32 %s508_s10, %s685_s14 }
   0xc   : > { %p77_p6 = scmp.eq.s32.totalorder %s320_s12, 1  ;;  %p36_p7 = scmp.eq.s32.totalorder %s33_s17, 0 }
   0xd   : > { %p575_p8 = por %p52_p5, %p51_p3  ;;  %p83_p10 = scmp.eq.s32.totalorder %s321_s13, 1 }
   0xe   : > { %p579_p9 = por %p77_p6, %p45_p1  ;;  %p351_p13 = scmp.lt.s32.totalorder %s512_s11, 2 }
   0xf   : > { %s584_s20 = scalar_select %p36_p7, %s500_s8, %s38_s15  }
  0x10   : > { %p586_p11 = por %p83_p10, %p51_p3  ;;  %s103_s22 = sand.u32 1, %s500_s8  }
  0x11   : > { %s324_s23 = sshll.u32 %s103_s22, 3  ;;  %s337_s24 = sshll.u32 %s508_s10, 7 }
  0x12   : > { %s675_s21 = scalar_select %p586_p11, 1, 0 }
  0x13   : > { %s115_s27 = scalar_lea.hbm %s670_s0, %s337_s24  ;;  %s107_s28 = scalar_lea.vmem [#allocation2], %s324_s23 }
  0x14   : > { %s117_s29 = sshll.u32 %s107_s28, 4  ;;  %p599_p0 = pnand %p351_p13, %p569_p4  ;;  %s118_s29 = int_to_ptr.vmem [resolvable:$true] %s117_s29 }
  0x15   : > { %p327_p1 = scmp.ge.s32.totalorder %s512_s11, 1  ;;  %p122_p2 = scmp.lt.s32.totalorder %s512_s11, 3 }
  0x16   : > { %s104_s2 = scalar_lea.sflag [#allocation3], %s103_s22  ;;  %p406_p3 = pneg %p599_p0 }
  0x17   : > { %s417_s3 = scalar_lea.vmem %s118_s29, 128  ;;  %s514_s4 = smov [#allocation2]  }
  0x18   : > { %p418_p5 = scmp.ne.s32.totalorder %s118_s29, %s417_s3  ;;  %s422_s5 = sshll.u32 %s514_s4, 4  ;;  %s423_s5 = int_to_ptr.vmem [resolvable:$false] %s422_s5 }
  0x19   : > { %s424_s12 = scalar_lea.vmem %s423_s5, 256  ;;  %p425_p10 = scmp.lt.s32.totalorder %s118_s29, %s423_s5 }
  0x1a   : > { %p420_p6 = pnand %p418_p5, %p406_p3  ;;  %p426_p12 = scmp.lt.s32.totalorder %s424_s12, %s417_s3 }
  0x1c   : > { %p421_p7 = pneg %p420_p6  ;;  %p427_p4 = por %p426_p12, %p425_p10 }
  0x1e   : > { %p428_p13 = pnand %p427_p4, %p421_p7 }
  0x20   : > { %431 = shalt.err (!%p428_p13)
}
  0x21   : > { %346 = dma.hbm_to_vmem [thread:$0]  (!%p599_p0), %s115_s27, 128, %s118_s29, %s104_s2  }
  0x22   : > { %p123_p11 = pnand %p327_p1, %p122_p2 }
  0x23   : > { %s614_s13 = sand.u32 (!%p123_p11), 1, %s496_s7  }
  0x24   : > { %126 = sbr.rel (%p123_p11) target bundleno = 94 (0x5e), region = 24  ;;  %s328_s15 = sshll.u32 (!%p123_p11), %s614_s13, 3 }
  0x25   : > { %s129_s16 = scalar_lea.sflag (!%p123_p11), [#allocation3], %s614_s13  ;;  %s132_s17 = scalar_lea.vmem (!%p123_p11), [#allocation2], %s328_s15 }
  0x29   : > { %483 = dma.done.wait (%p575_p8), %s129_s16, 128  }
  0x2a   : > { %485 = vsyncadd (%p575_p8), %s129_s16, 4294967168  ;;  %vm157_vm0 = vcmask 1043456   ;;  %v153_v0 = vld [vmem:[%s132_s17] sm:$0xff]  ;;  %v177_v5 = vlaneseq  ;;  %v515_v6 = vmov 839922192   ;;  %v516_v40 = vmov 0.0  }
  0x2b   : > { %v155_v1 = vcombine.high %v153_v0, %v153_v0  ;;  %v158_v2 = vsel %vm157_vm0, %v153_v0, -inf  ;;  %v180_v7 = vunpack.c.l.s4 %v515_v6  ;;  %s150_s18 = scalar_lea.vmem [#allocation5], %s328_s15  ;;  %s338_s23 = sshll.u32 %s504_s9, 7 }
  0x2c   : > { %v159_v3 = vrot.slane %v158_v2, 4  ;;  %v178_v12 = vshrl.u32 %v177_v5, 7  ;;  %s236_s22 = sshll.u32 %s150_s18, 4  ;;  %s234_s26 = scalar_lea.hbm %s671_s1, %s338_s23  ;;  %s237_s22 = int_to_ptr.vmem [resolvable:$true] %s236_s22 }
  0x2d   : > { %v165_v4 = vsel %vm157_vm0, %v155_v1, -inf  ;;  %v181_v13 = vunpack.c.0.s8 %v180_v7  ;;  %s220_s27 = scalar_lea.sflag [#allocation4], %s614_s13  ;;  %s432_s28 = scalar_lea.vmem %s237_s22, 128 }
  0x2e   : > { %v160_v8 = vmax.f32 %v158_v2, %v159_v3  ;;  %v166_v9 = vrot.slane %v165_v4, 4  ;;  %p433_p8 = scmp.ne.s32.totalorder %s237_s22, %s432_s28  ;;  %s517_s29 = smov [#allocation5]  }
  0x2f   : > { %v184_v18 = vsub.s32 %v181_v13, %v178_v12  ;;  %s436_s30 = sshll.u32 %s517_s29, 4  ;;  %s437_s30 = int_to_ptr.vmem [resolvable:$false] %s436_s30 }
  0x30   : > { %v161_v10 = vrot.slane %v160_v8, 2  ;;  %v167_v11 = vmax.f32 %v165_v4, %v166_v9  ;;  %p434_p11 = pnand %p433_p8, %p579_p9  ;;  %s438_s2 = scalar_lea.vmem %s437_s30, 256 }
  0x31   : > { %v185_v22 = vrot.slane %v178_v12, %v184_v18  ;;  %p439_p0 = scmp.lt.s32.totalorder %s237_s22, %s437_s30  ;;  %p440_p1 = scmp.lt.s32.totalorder %s438_s2, %s432_s28 }
  0x32   : > { %v162_v14 = vmax.f32 %v160_v8, %v161_v10  ;;  %v168_v15 = vrot.slane %v167_v11, 2  ;;  %p435_p12 = pneg %p434_p11 }
  0x33   : > { %p441_p2 = por %p440_p1, %p439_p0 }
  0x34   : > { %v163_v16 = vrot.slane %v162_v14, 1  ;;  %v169_v17 = vmax.f32 %v167_v11, %v168_v15 }
  0x35   : > { %p442_p3 = pnand %p441_p2, %p435_p12 }
  0x36   : > { %v164_v19 = vmax.f32 %v162_v14, %v163_v16  ;;  %v170_v20 = vrot.slane %v169_v17, 1 }
  0x38   : > { %v171_v21 = vmax.f32 %v169_v17, %v170_v20 }
  0x3a   : > { %v174_v23 = vcombine.low %v164_v19, %v171_v21 }
  0x3c   : > { %vm176_vm1 = vcmp.eq.f32.partialorder %v153_v0, %v174_v23 }
  0x3d   : > { %v186_v24 = vsel %vm176_vm1, %v185_v22, 4 }
  0x3e   : > { %v187_v25 = vcombine.high %v186_v24, %v186_v24  ;;  %v188_v26 = vsel %vm157_vm0, %v186_v24, 2147483647 }
  0x3f   : > { %v189_v27 = vrot.slane %v188_v26, 4 }
  0x40   : > { %v198_v28 = vsel %vm157_vm0, %v187_v25, 2147483647 }
  0x41   : > { %vm190_vm2 = vcmp.lt.s32.totalorder %v188_v26, %v189_v27  ;;  %v199_v29 = vrot.slane %v198_v28, 4 }
  0x42   : > { %v191_v30 = vsel %vm190_vm2, %v188_v26, %v189_v27 }
  0x43   : > { %v192_v31 = vrot.slane %v191_v30, 2  ;;  %vm200_vm3 = vcmp.lt.s32.totalorder %v198_v28, %v199_v29 }
  0x44   : > { %v201_v32 = vsel %vm200_vm3, %v198_v28, %v199_v29 }
  0x45   : > { %vm193_vm4 = vcmp.lt.s32.totalorder %v191_v30, %v192_v31  ;;  %v202_v33 = vrot.slane %v201_v32, 2 }
  0x46   : > { %v194_v34 = vsel %vm193_vm4, %v191_v30, %v192_v31 }
  0x47   : > { %v195_v35 = vrot.slane %v194_v34, 1  ;;  %vm203_vm5 = vcmp.lt.s32.totalorder %v201_v32, %v202_v33 }
  0x48   : > { %v204_v36 = vsel %vm203_vm5, %v201_v32, %v202_v33 }
  0x49   : > { %vm196_vm6 = vcmp.lt.s32.totalorder %v194_v34, %v195_v35  ;;  %v205_v37 = vrot.slane %v204_v36, 1 }
  0x4a   : > { %v197_v38 = vsel %vm196_vm6, %v194_v34, %v195_v35 }
  0x4b   : > { %vm206_vm7 = vcmp.lt.s32.totalorder %v204_v36, %v205_v37  ;;  %vm208_vm8 = vcmp.eq.s32.totalorder %v178_v12, %v197_v38 }
  0x4c   : > { %v207_v39 = vsel %vm206_vm7, %v204_v36, %v205_v37  ;;  %v330_v41 = vsel %vm208_vm8, 1.0, %v516_v40 }
  0x4d   : > { %vm209_vm9 = vcmp.eq.s32.totalorder %v178_v12, %v207_v39 }
  0x4e   : > { %v331_v42 = vsel %vm209_vm9, 1.0, %v516_v40 }
  0x4f   : > { %v216_v43 = vcombine.low %v330_v41, %v331_v42 }
  0x51   : > { %218 = vst [vmem:[%s150_s18] sm:$0xff] %v216_v43 }
  0x52   : > { %445 = shalt.err (!%p442_p3)
}
  0x53   : > { %s446_s9 = scalar_lea.hbm %s234_s26, 128  ;;  %s450_s5 = scalar_lea.hbm %s671_s1, 256 }
  0x54   : > { %p447_p5 = scmp.ne.s32.totalorder %s234_s26, %s446_s9  ;;  %p451_p10 = scmp.lt.s32.totalorder %s234_s26, %s671_s1 }
  0x55   : > { %p452_p4 = scmp.lt.s32.totalorder %s450_s5, %s446_s9 }
  0x56   : > { %p448_p6 = pnand %p447_p5, %p579_p9 }
  0x57   : > { %p453_p13 = por %p452_p4, %p451_p10 }
  0x58   : > { %p449_p7 = pneg %p448_p6 }
  0x5a   : > { %p454_p8 = pnand %p453_p13, %p449_p7 }
  0x5c   : > { %457 = shalt.err (!%p454_p8)
}
  0x5d   : > { %341 = dma.vmem_to_hbm [thread:$0]  (%p579_p9), %s237_s22, 128, %s234_s26, %s220_s27  }
  0x5e PF: > { %s248_s15 = sand.u32 1, %s492_s6   ;;  %p677_p11 = scmp.ne.s32.totalorder %s675_s21, 0 }
  0x5f   : > { %p678_p12 = scmp.ge.s32.totalorder %s512_s11, 2  ;;  %s249_s16 = scalar_lea.sflag [#allocation4], %s248_s15 }
  0x61   : > { %p348_p0 = pnand %p678_p12, %p677_p11 }
  0x63   : > { %p349_p1 = pneg %p348_p0 }
  0x65   : > { %487 = dma.done.wait (%p349_p1), %s249_s16, 128  }
  0x66   : > { %489 = vsyncadd (%p349_p1), %s249_s16, 4294967168  ;;  %s17_s11 = sadd.s32 1, %s512_s11   ;;  %s679_s6 = smov %s496_s7 }
  0x67   : > { %p14_p2 = scmp.ge.s32.totalorder %s17_s11, 4   ;;  %s680_s7 = smov %s500_s8 }
  0x68   : > { %s681_s8 = smov %s584_s20  ;;  %s682_s9 = smov %s508_s10 }
  0x69   : > { %s683_s10 = smov %s685_s14  ;;  %16 = sbr.rel (!%p14_p2) target bundleno = 6 (0x6), region = 69 }
  0x6e   :  { %254 = vsyncpa [#allocation3], 1 }
  0x6f   :  { %256 = vsyncpa [#allocation3 + $0x1], 1 }
  0x70   :  { %257 = vsyncpa [#allocation4], 1 }
  0x71   :  { %259 = vsyncpa [#allocation4 + $0x1], 1 }

</bundles_post_ra>
